<compile_context>
chip_gen: v5e
topology: v5e:2x2
jax: 0.10.0
libtpu: 0.0.40
codegen_flags: <defaults>
</compile_context>

<pallas_src>
import functools

import numpy as np
import jax
import jax.numpy as jnp
from jax.experimental import pallas as pl
from jax.experimental.pallas import tpu as pltpu

# ---- synthetic base_dict constants (small, mutually consistent) ------------
N_FFT = 64
HOP_LENGTH = 16
AUDIO_LEN = 256

N_FREQ = N_FFT // 2 + 1                         # onesided bins      = 33
N_FRAMES = 1 + AUDIO_LEN // HOP_LENGTH          # center-padded STFT = 17
L_FULL = N_FFT + HOP_LENGTH * (N_FRAMES - 1)    # OLA length         = 320
TRIM = N_FFT // 2                               # center trim        = 32

K_RAW = 2 * N_FREQ * N_FRAMES                   # re/im interleaved  = 1122
K_PAD = ((K_RAW + 127) // 128) * 128            # lane-aligned K     = 1152


# ----------------------------- Pallas kernel --------------------------------
def _istft_kernel(x_ref, b_ref, o_ref):
    # single fused MXU matmul: (1, K_PAD) bf16 @ (K_PAD, AUDIO_LEN) bf16,
    # f32 accumulation, lane-dense (1, 256) store.
    o_ref[...] = jnp.dot(x_ref[...], b_ref[...],
                         preferred_element_type=jnp.float32)


# --------------------- host-side constant basis (glue) ----------------------
def _build_basis():
    """Fold irfft basis, periodic Hann window, center-trimmed overlap-add and
    the inverse squared-window envelope into one (K_PAD, AUDIO_LEN) matrix.

    Row ordering matches Y_hat[0].reshape(-1): row = f*T*2 + t*2 + c
    with c=0 -> real coefficient, c=1 -> imag coefficient.
    """
    n = np.arange(N_FFT)
    win = 0.5 - 0.5 * np.cos(2.0 * np.pi * n / N_FFT)      # periodic Hann

    # overlap-added squared-window envelope (center-trimmed), with the same
    # >1e-11 guard torchaudio uses.
    env = np.zeros((L_FULL,), np.float64)
    starts = np.arange(N_FRAMES) * HOP_LENGTH
    idx = starts[:, None] + np.arange(N_FFT)[None, :]       # (T, N)
    np.add.at(env, idx.reshape(-1), np.tile(win ** 2, N_FRAMES))
    env_t = env[TRIM:TRIM + AUDIO_LEN]
    inv_env = 1.0 / np.where(env_t > 1e-11, env_t, 1.0)

    # which in-frame sample n feeds output sample m for each frame t
    t_idx = np.arange(N_FRAMES)
    m_idx = np.arange(AUDIO_LEN)
    n_map = m_idx[None, :] - t_idx[:, None] * HOP_LENGTH + TRIM    # (T, M)
    valid = (n_map >= 0) & (n_map < N_FFT)
    n_clip = np.clip(n_map, 0, N_FFT - 1)

    # irfft-as-matmul weights (imag of DC and Nyquist bins ignored).
    k = np.arange(N_FREQ)
    wk = np.full((N_FREQ,), 2.0)
    wk[0] = 1.0
    wk[-1] = 1.0
    ang = 2.0 * np.pi * k[:, None, None] * n_clip[None, :, :] / N_FFT  # (F,T,M)
    scale = (valid[None, :, :].astype(np.float64)
             * win[n_clip][None, :, :]
             * inv_env[None, None, :]) / N_FFT
    cos_part = wk[:, None, None] * np.cos(ang) * scale
    sin_part = -wk[:, None, None] * np.sin(ang) * scale
    sin_part[0] = 0.0
    sin_part[-1] = 0.0

    B = np.stack([cos_part, sin_part], axis=2).reshape(K_RAW, AUDIO_LEN)
    B_pad = np.zeros((K_PAD, AUDIO_LEN), np.float32)
    B_pad[:K_RAW] = B
    return B_pad


@functools.lru_cache(maxsize=1)
def _basis_device():
    """Build the fused basis once and keep it resident on-device in bf16."""
    return jax.device_put(jnp.asarray(_build_basis(), jnp.bfloat16))


# ----------------------------- wrapper (glue) -------------------------------
@jax.jit
def _istft_call(x_flat, basis):
    # bf16 inputs, f32 MXU accumulator; pad K to the lane-aligned 1152.
    x = jnp.pad(x_flat.astype(jnp.bfloat16), ((0, 0), (0, K_PAD - K_RAW)))

    out = pl.pallas_call(
        _istft_kernel,
        out_shape=jax.ShapeDtypeStruct((1, AUDIO_LEN), jnp.float32),
        grid=(1,),
        in_specs=[
            pl.BlockSpec((1, K_PAD), lambda i: (0, 0)),
            pl.BlockSpec((K_PAD, AUDIO_LEN), lambda i: (0, 0)),
        ],
        out_specs=pl.BlockSpec((1, AUDIO_LEN), lambda i: (0, 0)),
        compiler_params=pltpu.CompilerParams(
            dimension_semantics=("arbitrary",)),
    )(x, basis)
    return out[0]


def istft_pallas(Y_hat):
    assert Y_hat.shape == (1, N_FREQ, N_FRAMES, 2)
    # no transposes: Y_hat's natural (F, T, 2) flattening matches the rows of
    # the precomputed basis.
    x_flat = Y_hat.reshape(1, K_RAW)
    # TODO(synk): if multiple channels/batches are ever fed, stack them into
    # the M (row) dim of x and grid over batch with "parallel" semantics.
    return _istft_call(x_flat, _basis_device())   # .squeeze() -> (AUDIO_LEN,)


# ---------------------------------- main -------------------------------------
if __name__ == "__main__":
    key = jax.random.PRNGKey(0)
    Y_hat = jax.random.normal(key, (1, N_FREQ, N_FRAMES, 2), dtype=jnp.float32)

    out = jax.block_until_ready(istft_pallas(Y_hat))

    # pure-JAX reference with torchaudio.functional.istft semantics (f32)
    spec = Y_hat[0, ..., 0] + 1j * Y_hat[0, ..., 1]          # (F, T)
    frames = jnp.fft.irfft(spec, n=N_FFT, axis=0).T          # (T, N)
    win = 0.5 - 0.5 * jnp.cos(2.0 * jnp.pi * jnp.arange(N_FFT) / N_FFT)
    wf = frames * win[None, :]
    y_full = jnp.zeros((L_FULL,), jnp.float32)
    env = jnp.zeros((L_FULL,), jnp.float32)
    for t in range(N_FRAMES):
        y_full = y_full.at[t * HOP_LENGTH:t * HOP_LENGTH + N_FFT].add(wf[t])
        env = env.at[t * HOP_LENGTH:t * HOP_LENGTH + N_FFT].add(win ** 2)
    ref = (y_full / jnp.where(env > 1e-11, env, 1.0))[TRIM:TRIM + AUDIO_LEN]

    rel_err = float(jnp.max(jnp.abs(out - ref)) /
                    (jnp.max(jnp.abs(ref)) + 1e-12))
    assert out.shape == (AUDIO_LEN,), out.shape
    assert rel_err < 2e-2, f"mismatch vs reference, rel_err={rel_err}"
    print("KERNEL_OK")
</pallas_src>

<mosaic_0001>
module attributes {stable_mosaic.version = 11 : i64} {
  func.func @_istft_kernel(%arg0: i32, %arg1: memref<1x1152xbf16, #tpu.memory_space<vmem>>, %arg2: memref<1152x256xbf16, #tpu.memory_space<vmem>>, %arg3: memref<1x256xf32, #tpu.memory_space<vmem>>) attributes {dimension_semantics = [#tpu.dimension_semantics<arbitrary>], iteration_bounds = array<i64: 1>, scalar_prefetch = 0 : i64, scratch_operands = 0 : i64, tpu.core_type = #tpu.core_type<tc>, window_params = [{pipeline_mode = #tpu.pipeline_mode<synchronous>, transform_indices = @transform_0, window_bounds = array<i64: 1, 1152>}, {pipeline_mode = #tpu.pipeline_mode<synchronous>, transform_indices = @transform_1, window_bounds = array<i64: 1152, 256>}, {pipeline_mode = #tpu.pipeline_mode<synchronous>, transform_indices = @transform_2, window_bounds = array<i64: 1, 256>}]} {
    %c0 = arith.constant 0 : index
    %c0_0 = arith.constant 0 : index
    %0 = vector.load %arg1[%c0, %c0_0] : memref<1x1152xbf16, #tpu.memory_space<vmem>>, vector<1x1152xbf16>
    %c0_1 = arith.constant 0 : index
    %c0_2 = arith.constant 0 : index
    %1 = vector.load %arg2[%c0_1, %c0_2] : memref<1152x256xbf16, #tpu.memory_space<vmem>>, vector<1152x256xbf16>
    %cst = arith.constant dense<0.000000e+00> : vector<1x256xf32>
    %2 = tpu.matmul %0, %1, %cst {dimension_numbers = #tpu.dot_dimension_numbers<[1], [0], [0], [1], [0, 0, 1, 1], [], []>} : vector<1x1152xbf16>, vector<1152x256xbf16>, vector<1x256xf32> -> vector<1x256xf32>
    %c0_3 = arith.constant 0 : index
    %c0_4 = arith.constant 0 : index
    %3 = vector.load %arg3[%c0_3, %c0_4] : memref<1x256xf32, #tpu.memory_space<vmem>>, vector<1x256xf32>
    tpu.vector_store %arg3[%c0_3, %c0_4], %2 {strides = array<i32>} : memref<1x256xf32, #tpu.memory_space<vmem>>, vector<1x256xf32>,
    return
  }
  func.func @transform_0(%arg0: i32) -> (i32, i32) {
    %c0_i32 = arith.constant 0 : i32
    %c0_i32_0 = arith.constant 0 : i32
    %c0_i32_1 = arith.constant 0 : i32
    return %c0_i32, %c0_i32_0 : i32, i32
  }
  func.func @transform_1(%arg0: i32) -> (i32, i32) {
    %c0_i32 = arith.constant 0 : i32
    %c0_i32_0 = arith.constant 0 : i32
    %c0_i32_1 = arith.constant 0 : i32
    return %c0_i32, %c0_i32_0 : i32, i32
  }
  func.func @transform_2(%arg0: i32) -> (i32, i32) {
    %c0_i32 = arith.constant 0 : i32
    %c0_i32_0 = arith.constant 0 : i32
    %c0_i32_1 = arith.constant 0 : i32
    return %c0_i32, %c0_i32_0 : i32, i32
  }
}

</mosaic_0001>

<bundles_post_ra>
// kernel: _istft_call.1
= control target key start
LH: loop header
LB: loop body
LE: loop exit
PB: predicated region body
PF: predicated region fallthrough
CT: control target
= control target key end

     0   :  { %7 = vsyncpa [#allocation3], 0  ;;  %s2021_s0 = inlined_call_operand.vmem [shape: bf16[1,1152], index: 0, kind: input, shape index: {}]   ;;  %s2022_s1 = inlined_call_operand.hbm [shape: bf16[1152,256], index: 1, kind: input, shape index: {}]   ;;  %s2023_s2 = inlined_call_operand.hbm [shape: f32[1,256], index: 2, kind: output, shape index: {}]  }
   0x1   :  { %8 = vsyncpa [#allocation4], 0  ;;  %s15_s11 = sshll.u32 %s2022_s1, 4  ;;  %s1954_s12 = smov [#allocation2]   ;;  %s16_s11 = int_to_ptr.hbm [resolvable:$true] %s15_s11 }
   0x2   :  { %s17_s13 = sshll.u32 %s1954_s12, 4  ;;  %s1955_s14 = smov 128   ;;  %s18_s13 = int_to_ptr.vmem [resolvable:$true] %s17_s13 }
   0x3   :  { %s1956_s15 = smov 8  }
   0x4   :  { %23 = dma.hbm_to_vmem [thread:$0]  %s16_s11, 18432, %s18_s13, [#allocation3], %s1955_s14, %s1955_s14, %s1956_s15  }
   0x5   :  { %1950 = dma.done.wait [#allocation3], 18432  }
   0x6   :  { %1951 = vsyncadd [#allocation3], 4294948864  ;;  %v1236_v0 = vld [vmem:[#allocation2 + $0x70] sm:$0xf]  ;;  %v1769_v1 = vld [vmem:[#allocation2 + $0x74] sm:$0xf0] }
   0x7   :  { %v1300_v2 = vld [vmem:[#allocation2 + $0xf0] sm:$0xf]  ;;  %v1237_v3 = vor.u32 %v1769_v1, %v1236_v0  ;;  %v1785_v4 = vld [vmem:[#allocation2 + $0xf4] sm:$0xf0]  ;;  %v1228_v11 = vld [vmem:[#allocation2 + $0x60] sm:$0xf] }
   0x8   :  { %v1364_v5 = vld [vmem:[#allocation2 + $0x170] sm:$0xf]  ;;  %v1801_v6 = vld [vmem:[#allocation2 + $0x174] sm:$0xf0]  ;;  %v1301_v7 = vor.u32 %v1785_v4, %v1300_v2  ;;  %v1767_v13 = vld [vmem:[#allocation2 + $0x64] sm:$0xf0] }
   0x9   :  { %v1365_v8 = vor.u32 %v1801_v6, %v1364_v5  ;;  %v1428_v9 = vld [vmem:[#allocation2 + $0x1f0] sm:$0xf]  ;;  %v1817_v10 = vld [vmem:[#allocation2 + $0x1f4] sm:$0xf0]  ;;  %916 = vmatpush.bf16.msra.mxu0 %v1237_v3  ;;  %v1292_v14 = vld [vmem:[#allocation2 + $0xe0] sm:$0xf]  ;;  %v1229_v16 = vor.u32 %v1767_v13, %v1228_v11 }
   0xa   :  { %v1429_v12 = vor.u32 %v1817_v10, %v1428_v9  ;;  %v1783_v15 = vld [vmem:[#allocation2 + $0xe4] sm:$0xf0]  ;;  %929 = vmatpush.bf16.msra.mxu1 %v1301_v7  ;;  %v1356_v18 = vld [vmem:[#allocation2 + $0x160] sm:$0xf]  ;;  %v1220_v23 = vld [vmem:[#allocation2 + $0x50] sm:$0xf] }
   0xb   :  { %942 = vmatpush.bf16.msra.mxu2 %v1365_v8  ;;  %v1293_v17 = vor.u32 %v1783_v15, %v1292_v14  ;;  %v1799_v19 = vld [vmem:[#allocation2 + $0x164] sm:$0xf0]  ;;  %v1420_v20 = vld [vmem:[#allocation2 + $0x1e0] sm:$0xf]  ;;  %v1765_v24 = vld [vmem:[#allocation2 + $0x54] sm:$0xf0] }
   0xc   :  { %955 = vmatpush.bf16.msra.mxu3 %v1429_v12  ;;  %v1357_v21 = vor.u32 %v1799_v19, %v1356_v18  ;;  %v1815_v22 = vld [vmem:[#allocation2 + $0x1e4] sm:$0xf0]  ;;  %v1284_v26 = vld [vmem:[#allocation2 + $0xd0] sm:$0xf]  ;;  %v1781_v27 = vld [vmem:[#allocation2 + $0xd4] sm:$0xf0]  ;;  %v1221_v29 = vor.u32 %v1765_v24, %v1220_v23 }
   0xd   :  { %v1421_v25 = vor.u32 %v1815_v22, %v1420_v20  ;;  %v1348_v28 = vld [vmem:[#allocation2 + $0x150] sm:$0xf]  ;;  %917 = vmatpush.bf16.msra.mxu0 %v1229_v16  ;;  %v1797_v30 = vld [vmem:[#allocation2 + $0x154] sm:$0xf0]  ;;  %v1285_v33 = vor.u32 %v1781_v27, %v1284_v26  ;;  %v1212_v35 = vld [vmem:[#allocation2 + $0x40] sm:$0xf] }
   0xe   :  { %v1412_v31 = vld [vmem:[#allocation2 + $0x1d0] sm:$0xf]  ;;  %v1813_v32 = vld [vmem:[#allocation2 + $0x1d4] sm:$0xf0]  ;;  %930 = vmatpush.bf16.msra.mxu1 %v1293_v17  ;;  %v1349_v34 = vor.u32 %v1797_v30, %v1348_v28  ;;  %v1763_v36 = vld [vmem:[#allocation2 + $0x44] sm:$0xf0] }
   0xf   :  { %943 = vmatpush.bf16.msra.mxu2 %v1357_v21  ;;  %v1276_v37 = vld [vmem:[#allocation2 + $0xc0] sm:$0xf]  ;;  %v1413_v38 = vor.u32 %v1813_v32, %v1412_v31  ;;  %v1779_v39 = vld [vmem:[#allocation2 + $0xc4] sm:$0xf0]  ;;  %v1213_v44 = vor.u32 %v1763_v36, %v1212_v35  ;;  %v1204_v47 = vld [vmem:[#allocation2 + $0x30] sm:$0xf] }
  0x10   :  { %956 = vmatpush.bf16.msra.mxu3 %v1421_v25  ;;  %v1340_v40 = vld [vmem:[#allocation2 + $0x140] sm:$0xf]  ;;  %v1795_v41 = vld [vmem:[#allocation2 + $0x144] sm:$0xf0]  ;;  %v1277_v45 = vor.u32 %v1779_v39, %v1276_v37  ;;  %v1761_v48 = vld [vmem:[#allocation2 + $0x34] sm:$0xf0] }
  0x11   :  { %v1404_v42 = vld [vmem:[#allocation2 + $0x1c0] sm:$0xf]  ;;  %v1811_v43 = vld [vmem:[#allocation2 + $0x1c4] sm:$0xf0]  ;;  %918 = vmatpush.bf16.msra.mxu0 %v1221_v29  ;;  %v1341_v46 = vor.u32 %v1795_v41, %v1340_v40  ;;  %v1268_v49 = vld [vmem:[#allocation2 + $0xb0] sm:$0xf]  ;;  %v1205_v56 = vor.u32 %v1761_v48, %v1204_v47 }
  0x12   :  { %931 = vmatpush.bf16.msra.mxu1 %v1285_v33  ;;  %v1405_v50 = vor.u32 %v1811_v43, %v1404_v42  ;;  %v1777_v51 = vld [vmem:[#allocation2 + $0xb4] sm:$0xf0]  ;;  %v1332_v52 = vld [vmem:[#allocation2 + $0x130] sm:$0xf]  ;;  %v1196_v59 = vld [vmem:[#allocation2 + $0x20] sm:$0xf] }
  0x13   :  { %944 = vmatpush.bf16.msra.mxu2 %v1349_v34  ;;  %v1793_v53 = vld [vmem:[#allocation2 + $0x134] sm:$0xf0]  ;;  %v1396_v54 = vld [vmem:[#allocation2 + $0x1b0] sm:$0xf]  ;;  %v1269_v57 = vor.u32 %v1777_v51, %v1268_v49  ;;  %v1759_v60 = vld [vmem:[#allocation2 + $0x24] sm:$0xf0] }
  0x14   :  { %957 = vmatpush.bf16.msra.mxu3 %v1413_v38  ;;  %v1809_v55 = vld [vmem:[#allocation2 + $0x1b4] sm:$0xf0]  ;;  %v1333_v58 = vor.u32 %v1793_v53, %v1332_v52  ;;  %v1260_v61 = vld [vmem:[#allocation2 + $0xa0] sm:$0xf]  ;;  %v1775_v63 = vld [vmem:[#allocation2 + $0xa4] sm:$0xf0]  ;;  %v1197_v4 = vor.u32 %v1759_v60, %v1196_v59 }
  0x15   :  { %919 = vmatpush.bf16.msra.mxu0 %v1213_v44  ;;  %v1397_v62 = vor.u32 %v1809_v55, %v1396_v54  ;;  %v1324_v0 = vld [vmem:[#allocation2 + $0x120] sm:$0xf]  ;;  %v1791_v1 = vld [vmem:[#allocation2 + $0x124] sm:$0xf0]  ;;  %v1261_v5 = vor.u32 %v1775_v63, %v1260_v61  ;;  %v1188_v7 = vld [vmem:[#allocation2 + $0x10] sm:$0xf] }
  0x16   :  { %932 = vmatpush.bf16.msra.mxu1 %v1277_v45  ;;  %v1388_v2 = vld [vmem:[#allocation2 + $0x1a0] sm:$0xf]  ;;  %v1807_v3 = vld [vmem:[#allocation2 + $0x1a4] sm:$0xf0]  ;;  %v1325_v6 = vor.u32 %v1791_v1, %v1324_v0  ;;  %v1757_v8 = vld [vmem:[#allocation2 + $0x14] sm:$0xf0] }
  0x17   :  { %945 = vmatpush.bf16.msra.mxu2 %v1341_v46  ;;  %v1252_v9 = vld [vmem:[#allocation2 + $0x90] sm:$0xf]  ;;  %v1389_v10 = vor.u32 %v1807_v3, %v1388_v2  ;;  %v1773_v11 = vld [vmem:[#allocation2 + $0x94] sm:$0xf0]  ;;  %v1189_v16 = vor.u32 %v1757_v8, %v1188_v7  ;;  %v1180_v17 = vld [vmem:[#allocation2] sm:$0xf] }
  0x18   :  { %958 = vmatpush.bf16.msra.mxu3 %v1405_v50  ;;  %v1316_v12 = vld [vmem:[#allocation2 + $0x110] sm:$0xf]  ;;  %v1789_v13 = vld [vmem:[#allocation2 + $0x114] sm:$0xf0]  ;;  %v1755_v18 = vld [vmem:[#allocation2 + $0x4] sm:$0xf0]  ;;  %v1253_v19 = vor.u32 %v1773_v11, %v1252_v9 }
  0x19   :  { %920 = vmatpush.bf16.msra.mxu0 %v1205_v56  ;;  %v1380_v14 = vld [vmem:[#allocation2 + $0x190] sm:$0xf]  ;;  %v1805_v15 = vld [vmem:[#allocation2 + $0x194] sm:$0xf0]  ;;  %v1317_v20 = vor.u32 %v1789_v13, %v1316_v12  ;;  %v1244_v21 = vld [vmem:[#allocation2 + $0x80] sm:$0xf]  ;;  %v1181_v31 = vor.u32 %v1755_v18, %v1180_v17 }
  0x1a   :  { %933 = vmatpush.bf16.msra.mxu1 %v1269_v57  ;;  %v1771_v22 = vld [vmem:[#allocation2 + $0x84] sm:$0xf0]  ;;  %v1308_v23 = vld [vmem:[#allocation2 + $0x100] sm:$0xf]  ;;  %v1381_v24 = vor.u32 %v1805_v15, %v1380_v14  ;;  %v1492_v26 = vld [vmem:[#allocation2 + $0x270] sm:$0xf] }
  0x1b   :  { %946 = vmatpush.bf16.msra.mxu2 %v1333_v58  ;;  %v1787_v25 = vld [vmem:[#allocation2 + $0x104] sm:$0xf0]  ;;  %v1833_v27 = vld [vmem:[#allocation2 + $0x274] sm:$0xf0]  ;;  %v1556_v28 = vld [vmem:[#allocation2 + $0x2f0] sm:$0xf]  ;;  %v1245_v35 = vor.u32 %v1771_v22, %v1244_v21 }
  0x1c   :  { %959 = vmatpush.bf16.msra.mxu3 %v1397_v62  ;;  %v1849_v29 = vld [vmem:[#allocation2 + $0x2f4] sm:$0xf0]  ;;  %v1620_v30 = vld [vmem:[#allocation2 + $0x370] sm:$0xf]  ;;  %v1372_v33 = vld [vmem:[#allocation2 + $0x180] sm:$0xf]  ;;  %v1309_v36 = vor.u32 %v1787_v25, %v1308_v23  ;;  %v1493_v39 = vor.u32 %v1833_v27, %v1492_v26 }
  0x1d   :  { %921 = vmatpush.bf16.msra.mxu0 %v1197_v4  ;;  %v1865_v32 = vld [vmem:[#allocation2 + $0x374] sm:$0xf0]  ;;  %v1803_v34 = vld [vmem:[#allocation2 + $0x184] sm:$0xf0]  ;;  %v1684_v37 = vld [vmem:[#allocation2 + $0x3f0] sm:$0xf]  ;;  %v1557_v40 = vor.u32 %v1849_v29, %v1556_v28 }
  0x1e   :  { %934 = vmatpush.bf16.msra.mxu1 %v1261_v5  ;;  %v1881_v38 = vld [vmem:[#allocation2 + $0x3f4] sm:$0xf0]  ;;  %v1484_v41 = vld [vmem:[#allocation2 + $0x260] sm:$0xf]  ;;  %v1621_v42 = vor.u32 %v1865_v32, %v1620_v30  ;;  %v1373_v43 = vor.u32 %v1803_v34, %v1372_v33  ;;  %v1831_v44 = vld [vmem:[#allocation2 + $0x264] sm:$0xf0] }
  0x1f   :  { %947 = vmatpush.bf16.msra.mxu2 %v1325_v6  ;;  %v1548_v45 = vld [vmem:[#allocation2 + $0x2e0] sm:$0xf]  ;;  %v1847_v46 = vld [vmem:[#allocation2 + $0x2e4] sm:$0xf0]  ;;  %v1685_v47 = vor.u32 %v1881_v38, %v1684_v37  ;;  %v1485_v52 = vor.u32 %v1831_v44, %v1484_v41  ;;  %v1476_v54 = vld [vmem:[#allocation2 + $0x250] sm:$0xf] }
  0x20   :  { %960 = vmatpush.bf16.msra.mxu3 %v1389_v10  ;;  %v1612_v48 = vld [vmem:[#allocation2 + $0x360] sm:$0xf]  ;;  %v1863_v49 = vld [vmem:[#allocation2 + $0x364] sm:$0xf0]  ;;  %v1549_v53 = vor.u32 %v1847_v46, %v1548_v45  ;;  %v1829_v55 = vld [vmem:[#allocation2 + $0x254] sm:$0xf0] }
  0x21   :  { %922 = vmatpush.bf16.msra.mxu0 %v1189_v16  ;;  %v1676_v50 = vld [vmem:[#allocation2 + $0x3e0] sm:$0xf]  ;;  %v1879_v51 = vld [vmem:[#allocation2 + $0x3e4] sm:$0xf0]  ;;  %v1613_v56 = vor.u32 %v1863_v49, %v1612_v48  ;;  %v1540_v57 = vld [vmem:[#allocation2 + $0x2d0] sm:$0xf]  ;;  %v1477_v1 = vor.u32 %v1829_v55, %v1476_v54 }
  0x22   :  { %935 = vmatpush.bf16.msra.mxu1 %v1253_v19  ;;  %v1845_v58 = vld [vmem:[#allocation2 + $0x2d4] sm:$0xf0]  ;;  %v1677_v60 = vor.u32 %v1879_v51, %v1676_v50  ;;  %v1604_v61 = vld [vmem:[#allocation2 + $0x350] sm:$0xf]  ;;  %v1468_v3 = vld [vmem:[#allocation2 + $0x240] sm:$0xf] }
  0x23   :  { %948 = vmatpush.bf16.msra.mxu2 %v1317_v20  ;;  %v28_v59 = vld [vmem:[%s2021_s0] sm:$0xff]  ;;  %v1668_v63 = vld [vmem:[#allocation2 + $0x3d0] sm:$0xf]  ;;  %v1541_v2 = vor.u32 %v1845_v58, %v1540_v57  ;;  %v1827_v5 = vld [vmem:[#allocation2 + $0x244] sm:$0xf0]  ;;  %s1168_s22 = sshll.u32 %s2023_s2, 4  ;;  %s1169_s22 = int_to_ptr.hbm [resolvable:$true] %s1168_s22 }
  0x24   :  { %961 = vmatpush.bf16.msra.mxu3 %v1381_v24  ;;  %v1861_v62 = vld [vmem:[#allocation2 + $0x354] sm:$0xf0]  ;;  %175 = vst [vmem:[#allocation1] ss:$9 sm:$0xff] %v28_v59  ;;  %v1532_v6 = vld [vmem:[#allocation2 + $0x2c0] sm:$0xf]  ;;  %v1469_v14 = vor.u32 %v1827_v5, %v1468_v3 }
  0x25   :  { %923 = vmatpush.bf16.msra.mxu0 %v1181_v31  ;;  %v1877_v0 = vld [vmem:[#allocation2 + $0x3d4] sm:$0xf0]  ;;  %v1605_v4 = vor.u32 %v1861_v62, %v1604_v61  ;;  %v1843_v7 = vld [vmem:[#allocation2 + $0x2c4] sm:$0xf0]  ;;  %v1596_v9 = vld [vmem:[#allocation2 + $0x340] sm:$0xf] }
  0x26   :  { %936 = vmatpush.bf16.msra.mxu1 %v1245_v35  ;;  %v1669_v8 = vor.u32 %v1877_v0, %v1668_v63  ;;  %v1859_v10 = vld [vmem:[#allocation2 + $0x344] sm:$0xf0]  ;;  %v1660_v11 = vld [vmem:[#allocation2 + $0x3c0] sm:$0xf]  ;;  %v1460_v13 = vld [vmem:[#allocation2 + $0x230] sm:$0xf]  ;;  %v1533_v15 = vor.u32 %v1843_v7, %v1532_v6 }
  0x27   :  { %949 = vmatpush.bf16.msra.mxu2 %v1309_v36  ;;  %v1875_v12 = vld [vmem:[#allocation2 + $0x3c4] sm:$0xf0]  ;;  %v1825_v16 = vld [vmem:[#allocation2 + $0x234] sm:$0xf0]  ;;  %v1524_v17 = vld [vmem:[#allocation2 + $0x2b0] sm:$0xf]  ;;  %v1597_v19 = vor.u32 %v1859_v10, %v1596_v9 }
  0x28   :  { %962 = vmatpush.bf16.msra.mxu3 %v1373_v43  ;;  %v1841_v18 = vld [vmem:[#allocation2 + $0x2b4] sm:$0xf0]  ;;  %v1661_v23 = vor.u32 %v1875_v12, %v1660_v11  ;;  %v1588_v24 = vld [vmem:[#allocation2 + $0x330] sm:$0xf]  ;;  %v1461_v29 = vor.u32 %v1825_v16, %v1460_v13  ;;  %v1452_v31 = vld [vmem:[#allocation2 + $0x220] sm:$0xf] }
  0x29   :  { %968 = vmatpush.bf16.msrb.mxu0 %v1493_v39  ;;  %v1857_v25 = vld [vmem:[#allocation2 + $0x334] sm:$0xf0]  ;;  %v1652_v27 = vld [vmem:[#allocation2 + $0x3b0] sm:$0xf]  ;;  %v1525_v30 = vor.u32 %v1841_v18, %v1524_v17  ;;  %v1823_v33 = vld [vmem:[#allocation2 + $0x224] sm:$0xf0] }
  0x2a   :  { %981 = vmatpush.bf16.msrb.mxu1 %v1557_v40  ;;  %v1873_v28 = vld [vmem:[#allocation2 + $0x3b4] sm:$0xf0]  ;;  %v1589_v32 = vor.u32 %v1857_v25, %v1588_v24  ;;  %v1516_v34 = vld [vmem:[#allocation2 + $0x2a0] sm:$0xf]  ;;  %v1839_v35 = vld [vmem:[#allocation2 + $0x2a4] sm:$0xf0]  ;;  %v1453_v43 = vor.u32 %v1823_v33, %v1452_v31 }
  0x2b   :  { %994 = vmatpush.bf16.msrb.mxu2 %v1621_v42  ;;  %v1979_v20 = vld [vmem:[#allocation1 + $0x12] sm:$0xff]  ;;  %v1981_v21 = vld [vmem:[#allocation1] sm:$0xff]  ;;  %v1986_v26 = vld [vmem:[#allocation1 + $0x9] sm:$0xff]  ;;  %v1653_v36 = vor.u32 %v1873_v28, %v1652_v27  ;;  %v1517_v44 = vor.u32 %v1839_v35, %v1516_v34  ;;  %vm1153_vm0 = vcmask 1040384  }
  0x2c   :  { %1007 = vmatpush.bf16.msrb.mxu3 %v1685_v47  ;;  %v1983_v22 = vld [vmem:[#allocation1 + $0x1b] sm:$0xff]  ;;  %950 = vmatmul.bf16.vlgmr.msra.gmra.mxu2 %v1979_v20  ;;  %v1580_v37 = vld [vmem:[#allocation2 + $0x320] sm:$0xf]  ;;  %v1855_v38 = vld [vmem:[#allocation2 + $0x324] sm:$0xf0] }
  0x2d   :  { %969 = vmatpush.bf16.msrb.mxu0 %v1485_v52  ;;  %963 = vmatmul.bf16.vlgmr.msra.gmra.mxu3 %v1983_v22  ;;  %v1644_v39 = vld [vmem:[#allocation2 + $0x3a0] sm:$0xf]  ;;  %v1871_v40 = vld [vmem:[#allocation2 + $0x3a4] sm:$0xf0]  ;;  %v1444_v41 = vld [vmem:[#allocation2 + $0x210] sm:$0xf]  ;;  %v1581_v48 = vor.u32 %v1855_v38, %v1580_v37 }
  0x2e   :  { %982 = vmatpush.bf16.msrb.mxu1 %v1549_v53  ;;  %924 = vmatmul.bf16.vlgmr.msra.gmra.mxu0 %v1981_v21  ;;  %v1821_v42 = vld [vmem:[#allocation2 + $0x214] sm:$0xf0]  ;;  %v1508_v45 = vld [vmem:[#allocation2 + $0x290] sm:$0xf]  ;;  %v1993_v51 = vld [vmem:[#allocation1 + $0x24] sm:$0xff]  ;;  %v1645_v52 = vor.u32 %v1871_v40, %v1644_v39 }
  0x2f   :  { %995 = vmatpush.bf16.msrb.mxu2 %v1613_v56  ;;  %937 = vmatmul.bf16.vlgmr.msra.gmra.mxu1 %v1986_v26  ;;  %v1837_v46 = vld [vmem:[#allocation2 + $0x294] sm:$0xf0]  ;;  %v1572_v47 = vld [vmem:[#allocation2 + $0x310] sm:$0xf]  ;;  %v29_v54 = vld [vmem:[%s2021_s0 + $0x8] sm:$0x1]  ;;  %v1445_v58 = vor.u32 %v1821_v42, %v1444_v41 }
  0x30   :  { %1008 = vmatpush.bf16.msrb.mxu3 %v1677_v60  ;;  %v1853_v49 = vld [vmem:[#allocation2 + $0x314] sm:$0xf0]  ;;  %v1991_v50 = vld [vmem:[#allocation1 + $0x36] sm:$0xff]  ;;  %v2000_v55 = vld [vmem:[#allocation1 + $0x2d] sm:$0xff]  ;;  %v1509_v59 = vor.u32 %v1837_v46, %v1508_v45  ;;  %s1957_s0 = smov [#allocation5]  }
  0x31   :  { %970 = vmatpush.bf16.msrb.mxu0 %v1477_v1  ;;  %v1995_v53 = vld [vmem:[#allocation1 + $0x3f] sm:$0xff]  ;;  %v1636_v56 = vld [vmem:[#allocation2 + $0x390] sm:$0xf]  ;;  %v1436_v60 = vld [vmem:[#allocation2 + $0x200] sm:$0xf]  ;;  %v1573_v63 = vor.u32 %v1853_v49, %v1572_v47  ;;  %s1166_s19 = sshll.u32 %s1957_s0, 4  ;;  %s1167_s19 = int_to_ptr.vmem [resolvable:$true] %s1166_s19 }
  0x32   :  { %983 = vmatpush.bf16.msrb.mxu1 %v1541_v2  ;;  %v1869_v57 = vld [vmem:[#allocation2 + $0x394] sm:$0xf0]  ;;  %185 = vst [vmem:[#allocation1] ss:$9 sm:$0xff] %v29_v54  ;;  %v1819_v61 = vld [vmem:[#allocation2 + $0x204] sm:$0xf0] }
  0x33   :  { %996 = vmatpush.bf16.msrb.mxu2 %v1605_v4  ;;  %v1500_v62 = vld [vmem:[#allocation2 + $0x280] sm:$0xf]  ;;  %v1835_v0 = vld [vmem:[#allocation2 + $0x284] sm:$0xf0]  ;;  %v1637_v3 = vor.u32 %v1869_v57, %v1636_v56  ;;  %v1748_v4 = vld [vmem:[#allocation2 + $0x470] sm:$0xf]  ;;  %v1437_v10 = vor.u32 %v1819_v61, %v1436_v60 }
  0x34   :  { %1009 = vmatpush.bf16.msrb.mxu3 %v1669_v8  ;;  %v1564_v1 = vld [vmem:[#allocation2 + $0x300] sm:$0xf]  ;;  %v1851_v2 = vld [vmem:[#allocation2 + $0x304] sm:$0xf0]  ;;  %v1897_v5 = vld [vmem:[#allocation2 + $0x474] sm:$0xf0]  ;;  %v1501_v11 = vor.u32 %v1835_v0, %v1500_v62 }
  0x35   :  { %971 = vmatpush.bf16.msrb.mxu0 %v1469_v14  ;;  %v1768_v6 = vld [vmem:[#allocation2 + $0x74] sm:$0xf]  ;;  %v1238_v7 = vld [vmem:[#allocation2 + $0x78] sm:$0xf0]  ;;  %v1628_v12 = vld [vmem:[#allocation2 + $0x380] sm:$0xf]  ;;  %v1565_v14 = vor.u32 %v1851_v2, %v1564_v1 }
  0x36   :  { %984 = vmatpush.bf16.msrb.mxu1 %v1533_v15  ;;  %v1784_v8 = vld [vmem:[#allocation2 + $0xf4] sm:$0xf]  ;;  %v1302_v9 = vld [vmem:[#allocation2 + $0xf8] sm:$0xf0]  ;;  %v1867_v13 = vld [vmem:[#allocation2 + $0x384] sm:$0xf0]  ;;  %v1749_v15 = vor.u32 %v1897_v5, %v1748_v4  ;;  %v1241_v18 = vor.u32 %v1768_v6, %v1238_v7 }
  0x37   :  { %997 = vmatpush.bf16.msrb.mxu2 %v1597_v19  ;;  %v1800_v16 = vld [vmem:[#allocation2 + $0x174] sm:$0xf]  ;;  %v1366_v17 = vld [vmem:[#allocation2 + $0x178] sm:$0xf0]  ;;  %v1305_v19 = vor.u32 %v1784_v8, %v1302_v9  ;;  %v1895_v24 = vld [vmem:[#allocation2 + $0x464] sm:$0xf0]  ;;  %v1629_v27 = vor.u32 %v1867_v13, %v1628_v12 }
  0x38   :  { %1010 = vmatpush.bf16.msrb.mxu3 %v1661_v23  ;;  %v1740_v23 = vld [vmem:[#allocation2 + $0x460] sm:$0xf]  ;;  %v1766_v25 = vld [vmem:[#allocation2 + $0x64] sm:$0xf]  ;;  %v1230_v28 = vld [vmem:[#allocation2 + $0x68] sm:$0xf0]  ;;  %v1369_v31 = vor.u32 %v1800_v16, %v1366_v17 }
  0x39   :  { %972 = vmatpush.bf16.msrb.mxu0 %v1461_v29  ;;  %v1782_v29 = vld [vmem:[#allocation2 + $0xe4] sm:$0xf]  ;;  %v1358_v34 = vld [vmem:[#allocation2 + $0x168] sm:$0xf0]  ;;  %v1233_v35 = vor.u32 %v1766_v25, %v1230_v28  ;;  %v1732_v37 = vld [vmem:[#allocation2 + $0x450] sm:$0xf] }
  0x3a   :  { %985 = vmatpush.bf16.msrb.mxu1 %v1525_v30  ;;  %v1294_v30 = vld [vmem:[#allocation2 + $0xe8] sm:$0xf0]  ;;  %v1798_v33 = vld [vmem:[#allocation2 + $0x164] sm:$0xf]  ;;  %v1893_v38 = vld [vmem:[#allocation2 + $0x454] sm:$0xf0] }
  0x3b   :  { %998 = vmatpush.bf16.msrb.mxu2 %v1589_v32  ;;  %v1741_v32 = vor.u32 %v1895_v24, %v1740_v23  ;;  %v1764_v39 = vld [vmem:[#allocation2 + $0x54] sm:$0xf]  ;;  %v1222_v40 = vld [vmem:[#allocation2 + $0x58] sm:$0xf0]  ;;  %v1724_v49 = vld [vmem:[#allocation2 + $0x440] sm:$0xf] }
  0x3c   :  { %1011 = vmatpush.bf16.msrb.mxu3 %v1653_v36  ;;  %v1297_v36 = vor.u32 %v1782_v29, %v1294_v30  ;;  %v1780_v41 = vld [vmem:[#allocation2 + $0xd4] sm:$0xf]  ;;  %v1286_v42 = vld [vmem:[#allocation2 + $0xd8] sm:$0xf0]  ;;  %v1225_v47 = vor.u32 %v1764_v39, %v1222_v40  ;;  %v1762_v54 = vld [vmem:[#allocation2 + $0x44] sm:$0xf] }
  0x3d   :  { %973 = vmatpush.bf16.msrb.mxu0 %v1453_v43  ;;  %v1361_v43 = vor.u32 %v1798_v33, %v1358_v34  ;;  %v1796_v45 = vld [vmem:[#allocation2 + $0x154] sm:$0xf]  ;;  %v1350_v46 = vld [vmem:[#allocation2 + $0x158] sm:$0xf0]  ;;  %v1214_v56 = vld [vmem:[#allocation2 + $0x48] sm:$0xf0] }
  0x3e   :  { %986 = vmatpush.bf16.msrb.mxu1 %v1517_v44  ;;  %v1733_v44 = vor.u32 %v1893_v38, %v1732_v37  ;;  %v1778_v57 = vld [vmem:[#allocation2 + $0xc4] sm:$0xf]  ;;  %v1342_v62 = vld [vmem:[#allocation2 + $0x148] sm:$0xf0]  ;;  %v1716_v1 = vld [vmem:[#allocation2 + $0x430] sm:$0xf] }
  0x3f   :  { %999 = vmatpush.bf16.msrb.mxu2 %v1581_v48  ;;  %v1289_v48 = vor.u32 %v1780_v41, %v1286_v42  ;;  %v1794_v61 = vld [vmem:[#allocation2 + $0x144] sm:$0xf]  ;;  %v1889_v2 = vld [vmem:[#allocation2 + $0x434] sm:$0xf0]  ;;  %v1206_v4 = vld [vmem:[#allocation2 + $0x38] sm:$0xf0] }
  0x40   :  { %1012 = vmatpush.bf16.msrb.mxu3 %v1645_v52  ;;  %v1891_v52 = vld [vmem:[#allocation2 + $0x444] sm:$0xf0]  ;;  %v1776_v5 = vld [vmem:[#allocation2 + $0xb4] sm:$0xf]  ;;  %v1270_v6 = vld [vmem:[#allocation2 + $0xb8] sm:$0xf0]  ;;  %v1345_v7 = vor.u32 %v1794_v61, %v1342_v62  ;;  %v1717_v8 = vor.u32 %v1889_v2, %v1716_v1 }
  0x41   :  { %974 = vmatpush.bf16.msrb.mxu0 %v1445_v58  ;;  %v1278_v58 = vld [vmem:[#allocation2 + $0xc8] sm:$0xf0]  ;;  %v1725_v60 = vor.u32 %v1891_v52, %v1724_v49  ;;  %v1792_v9 = vld [vmem:[#allocation2 + $0x134] sm:$0xf]  ;;  %v1273_v12 = vor.u32 %v1776_v5, %v1270_v6  ;;  %v1708_v13 = vld [vmem:[#allocation2 + $0x420] sm:$0xf] }
  0x42   :  { %987 = vmatpush.bf16.msrb.mxu1 %v1509_v59  ;;  %v1353_v59 = vor.u32 %v1796_v45, %v1350_v46  ;;  %v1281_v0 = vor.u32 %v1778_v57, %v1278_v58  ;;  %v1198_v16 = vld [vmem:[#allocation2 + $0x28] sm:$0xf0]  ;;  %v1774_v17 = vld [vmem:[#allocation2 + $0xa4] sm:$0xf]  ;;  %v1700_v29 = vld [vmem:[#allocation2 + $0x410] sm:$0xf] }
  0x43   :  { %1000 = vmatpush.bf16.msrb.mxu2 %v1573_v63  ;;  %v1217_v63 = vor.u32 %v1762_v54, %v1214_v56  ;;  %v1790_v24 = vld [vmem:[#allocation2 + $0x124] sm:$0xf]  ;;  %v1326_v25 = vld [vmem:[#allocation2 + $0x128] sm:$0xf0]  ;;  %v1885_v30 = vld [vmem:[#allocation2 + $0x414] sm:$0xf0] }
  0x44   :  { %1013 = vmatpush.bf16.msrb.mxu3 %v1637_v3  ;;  %v1760_v3 = vld [vmem:[#allocation2 + $0x34] sm:$0xf]  ;;  %v1254_v34 = vld [vmem:[#allocation2 + $0x98] sm:$0xf0]  ;;  %v1701_v37 = vor.u32 %v1885_v30, %v1700_v29  ;;  %v1692_v39 = vld [vmem:[#allocation2 + $0x400] sm:$0xf] }
  0x45   :  { %975 = vmatpush.bf16.msrb.mxu0 %v1437_v10  ;;  %v1334_v10 = vld [vmem:[#allocation2 + $0x138] sm:$0xf0]  ;;  %v1772_v33 = vld [vmem:[#allocation2 + $0x94] sm:$0xf]  ;;  %v1883_v40 = vld [vmem:[#allocation2 + $0x404] sm:$0xf0] }
  0x46   :  { %988 = vmatpush.bf16.msrb.mxu1 %v1501_v11  ;;  %v1209_v11 = vor.u32 %v1760_v3, %v1206_v4  ;;  %v1318_v38 = vld [vmem:[#allocation2 + $0x118] sm:$0xf0]  ;;  %v1257_v42 = vor.u32 %v1772_v33, %v1254_v34  ;;  %v1770_v45 = vld [vmem:[#allocation2 + $0x84] sm:$0xf]  ;;  %v1246_v46 = vld [vmem:[#allocation2 + $0x88] sm:$0xf0]  ;;  %v1693_v57 = vor.u32 %v1883_v40, %v1692_v39 }
  0x47   :  { %1001 = vmatpush.bf16.msrb.mxu2 %v1565_v14  ;;  %v1887_v14 = vld [vmem:[#allocation2 + $0x424] sm:$0xf0]  ;;  %v1832_v52 = vld [vmem:[#allocation2 + $0x274] sm:$0xf]  ;;  %v1494_v54 = vld [vmem:[#allocation2 + $0x278] sm:$0xf0]  ;;  %v1249_v62 = vor.u32 %v1770_v45, %v1246_v46 }
  0x48   :  { %1014 = vmatpush.bf16.msrb.mxu3 %v1629_v27  ;;  %976 = vmatmul.bf16.vlgmr.msrb.gmra.mxu0 %v1993_v51  ;;  %v1709_v23 = vor.u32 %v1887_v14, %v1708_v13  ;;  %v1848_v56 = vld [vmem:[#allocation2 + $0x2f4] sm:$0xf]  ;;  %v1558_v58 = vld [vmem:[#allocation2 + $0x2f8] sm:$0xf0]  ;;  %v1497_v2 = vor.u32 %v1832_v52, %v1494_v54  ;;  %v1814_v3 = vld [vmem:[#allocation2 + $0x1e4] sm:$0xf] }
  0x49   :  { %1020 = vmatpush.bf16.msra.mxu0 %v1749_v15  ;;  %989 = vmatmul.bf16.vlgmr.msrb.gmra.mxu1 %v2000_v55  ;;  %v1758_v15 = vld [vmem:[#allocation2 + $0x24] sm:$0xf]  ;;  %v1561_v4 = vor.u32 %v1848_v56, %v1558_v58  ;;  %v1422_v6 = vld [vmem:[#allocation2 + $0x1e8] sm:$0xf0]  ;;  %v1860_v29 = vld [vmem:[#allocation2 + $0x354] sm:$0xf] }
  0x4a   :  { %1033 = vmatpush.bf16.msra.mxu1 %v1241_v18  ;;  %1002 = vmatmul.bf16.vlgmr.msrb.gmra.mxu2 %v1991_v50  ;;  %v1262_v18 = vld [vmem:[#allocation2 + $0xa8] sm:$0xf0]  ;;  %v1201_v27 = vor.u32 %v1758_v15, %v1198_v16  ;;  %v1862_v13 = vld [vmem:[#allocation2 + $0x364] sm:$0xf]  ;;  %v1425_v15 = vor.u32 %v1814_v3, %v1422_v6  ;;  %v1606_v30 = vld [vmem:[#allocation2 + $0x358] sm:$0xf0] }
  0x4b   :  { %1046 = vmatpush.bf16.msra.mxu2 %v1305_v19  ;;  %1015 = vmatmul.bf16.vlgmr.msrb.gmra.mxu3 %v1995_v53  ;;  %v1337_v19 = vor.u32 %v1792_v9, %v1334_v10  ;;  %v1265_v28 = vor.u32 %v1774_v17, %v1262_v18  ;;  %v1846_v10 = vld [vmem:[#allocation2 + $0x2e4] sm:$0xf]  ;;  %v1614_v14 = vld [vmem:[#allocation2 + $0x368] sm:$0xf0]  ;;  %v1812_v17 = vld [vmem:[#allocation2 + $0x1d4] sm:$0xf] }
  0x4c   :  { %1059 = vmatpush.bf16.msra.mxu3 %v1369_v31  ;;  %v1756_v31 = vld [vmem:[#allocation2 + $0x14] sm:$0xf]  ;;  %v1810_v33 = vld [vmem:[#allocation2 + $0x1c4] sm:$0xf]  ;;  %v1534_v40 = vld [vmem:[#allocation2 + $0x2c8] sm:$0xf0] }
  0x4d   :  { %1021 = vmatpush.bf16.msra.mxu0 %v1741_v32  ;;  %v1190_v32 = vld [vmem:[#allocation2 + $0x18] sm:$0xf0]  ;;  %v1842_v39 = vld [vmem:[#allocation2 + $0x2c4] sm:$0xf]  ;;  %v1824_v46 = vld [vmem:[#allocation2 + $0x234] sm:$0xf] }
  0x4e   :  { %1034 = vmatpush.bf16.msra.mxu1 %v1233_v35  ;;  %v1329_v35 = vor.u32 %v1790_v24, %v1326_v25  ;;  %v1193_v41 = vor.u32 %v1756_v31, %v1190_v32  ;;  %v1478_v24 = vld [vmem:[#allocation2 + $0x258] sm:$0xf0]  ;;  %v1617_v25 = vor.u32 %v1862_v13, %v1614_v14  ;;  %v1856_v52 = vld [vmem:[#allocation2 + $0x334] sm:$0xf]  ;;  %v1806_v58 = vld [vmem:[#allocation2 + $0x1a4] sm:$0xf] }
  0x4f   :  { %1047 = vmatpush.bf16.msra.mxu2 %v1297_v36  ;;  %v1788_v36 = vld [vmem:[#allocation2 + $0x114] sm:$0xf]  ;;  %v1398_v45 = vld [vmem:[#allocation2 + $0x1b8] sm:$0xf0]  ;;  %v1582_v3 = vld [vmem:[#allocation2 + $0x328] sm:$0xf0] }
  0x50   :  { %1060 = vmatpush.bf16.msra.mxu3 %v1361_v43  ;;  %v1754_v43 = vld [vmem:[#allocation2 + $0x4] sm:$0xf]  ;;  %v1321_v49 = vor.u32 %v1788_v36, %v1318_v38  ;;  %v1609_v38 = vor.u32 %v1860_v29, %v1606_v30  ;;  %v1590_v54 = vld [vmem:[#allocation2 + $0x338] sm:$0xf0]  ;;  %v1804_v6 = vld [vmem:[#allocation2 + $0x194] sm:$0xf] }
  0x51   :  { %1022 = vmatpush.bf16.msra.mxu0 %v1733_v44  ;;  %v1182_v44 = vld [vmem:[#allocation2 + $0x8] sm:$0xf0]  ;;  %v1826_v36 = vld [vmem:[#allocation2 + $0x244] sm:$0xf]  ;;  %v1836_v13 = vld [vmem:[#allocation2 + $0x294] sm:$0xf] }
  0x52   :  { %1035 = vmatpush.bf16.msra.mxu1 %v1225_v47  ;;  %v1816_v47 = vld [vmem:[#allocation2 + $0x1f4] sm:$0xf]  ;;  %v1185_v61 = vor.u32 %v1754_v43, %v1182_v44  ;;  %v1537_v44 = vor.u32 %v1842_v39, %v1534_v40  ;;  %v1510_v14 = vld [vmem:[#allocation2 + $0x298] sm:$0xf0]  ;;  %v1502_v29 = vld [vmem:[#allocation2 + $0x288] sm:$0xf0] }
  0x53   :  { %1048 = vmatpush.bf16.msra.mxu2 %v1289_v48  ;;  %v1430_v48 = vld [vmem:[#allocation2 + $0x1f8] sm:$0xf0]  ;;  %v1808_v43 = vld [vmem:[#allocation2 + $0x1b4] sm:$0xf] }
  0x54   :  { %1061 = vmatpush.bf16.msra.mxu3 %v1353_v59  ;;  %v1786_v59 = vld [vmem:[#allocation2 + $0x104] sm:$0xf]  ;;  %v1433_v1 = vor.u32 %v1816_v47, %v1430_v48  ;;  %v1462_v47 = vld [vmem:[#allocation2 + $0x238] sm:$0xf0]  ;;  %v1401_v56 = vor.u32 %v1808_v43, %v1398_v45 }
  0x55   :  { %1023 = vmatpush.bf16.msra.mxu0 %v1725_v60  ;;  %v1310_v60 = vld [vmem:[#allocation2 + $0x108] sm:$0xf0]  ;;  %v1894_v43 = vld [vmem:[#allocation2 + $0x464] sm:$0xf] }
  0x56   :  { %1036 = vmatpush.bf16.msra.mxu1 %v1217_v63  ;;  %v1864_v63 = vld [vmem:[#allocation2 + $0x374] sm:$0xf]  ;;  %v1313_v5 = vor.u32 %v1786_v59, %v1310_v60  ;;  %v1390_v60 = vld [vmem:[#allocation2 + $0x1a8] sm:$0xf0] }
  0x57   :  { %1049 = vmatpush.bf16.msra.mxu2 %v1281_v0  ;;  %v1622_v0 = vld [vmem:[#allocation2 + $0x378] sm:$0xf0] }
  0x58   :  { %1062 = vmatpush.bf16.msra.mxu3 %v1345_v7  ;;  %v1830_v7 = vld [vmem:[#allocation2 + $0x264] sm:$0xf]  ;;  %v1625_v9 = vor.u32 %v1864_v63, %v1622_v0  ;;  %v1593_v63 = vor.u32 %v1856_v52, %v1590_v54 }
  0x59   :  { %1024 = vmatpush.bf16.msra.mxu0 %v1717_v8  ;;  %v1486_v8 = vld [vmem:[#allocation2 + $0x268] sm:$0xf0]  ;;  %v1838_v0 = vld [vmem:[#allocation2 + $0x2a4] sm:$0xf] }
  0x5a   :  { %1037 = vmatpush.bf16.msra.mxu1 %v1209_v11  ;;  %v1550_v11 = vld [vmem:[#allocation2 + $0x2e8] sm:$0xf0]  ;;  %v1489_v16 = vor.u32 %v1830_v7, %v1486_v8  ;;  %v1382_v8 = vld [vmem:[#allocation2 + $0x198] sm:$0xf0] }
  0x5b   :  { %1050 = vmatpush.bf16.msra.mxu2 %v1273_v12  ;;  %v2006_v12 = vld [vmem:[#allocation1] sm:$0xff]  ;;  %v1553_v18 = vor.u32 %v1846_v10, %v1550_v11 }
  0x5c   :  { %1063 = vmatpush.bf16.msra.mxu3 %v1337_v19  ;;  %v1414_v19 = vld [vmem:[#allocation2 + $0x1d8] sm:$0xf0] }
  0x5d   :  { %1025 = vmatpush.bf16.msra.mxu0 %v1709_v23  ;;  %v1828_v23 = vld [vmem:[#allocation2 + $0x254] sm:$0xf]  ;;  %v1417_v31 = vor.u32 %v1812_v17, %v1414_v19  ;;  %v1446_v10 = vld [vmem:[#allocation2 + $0x218] sm:$0xf0]  ;;  %v1385_v17 = vor.u32 %v1804_v6, %v1382_v8  ;;  %v1802_v19 = vld [vmem:[#allocation2 + $0x184] sm:$0xf] }
  0x5e   :  { %1038 = vmatpush.bf16.msra.mxu1 %v1201_v27  ;;  %v1844_v27 = vld [vmem:[#allocation2 + $0x2d4] sm:$0xf]  ;;  %v1481_v32 = vor.u32 %v1828_v23, %v1478_v24  ;;  %v1374_v23 = vld [vmem:[#allocation2 + $0x188] sm:$0xf0]  ;;  %v1818_v24 = vld [vmem:[#allocation2 + $0x204] sm:$0xf] }
  0x5f   :  { %1051 = vmatpush.bf16.msra.mxu2 %v1265_v28  ;;  %v1542_v28 = vld [vmem:[#allocation2 + $0x2d8] sm:$0xf0]  ;;  %v1868_v6 = vld [vmem:[#allocation2 + $0x394] sm:$0xf] }
  0x60   :  { %1064 = vmatpush.bf16.msra.mxu3 %v1329_v35  ;;  %v1545_v34 = vor.u32 %v1844_v27, %v1542_v28  ;;  %v1406_v35 = vld [vmem:[#allocation2 + $0x1c8] sm:$0xf0]  ;;  %v1834_v28 = vld [vmem:[#allocation2 + $0x284] sm:$0xf]  ;;  %v1884_v8 = vld [vmem:[#allocation2 + $0x414] sm:$0xf] }
  0x61   :  { %1026 = vmatpush.bf16.msra.mxu0 %v1701_v37  ;;  %v1470_v37 = vld [vmem:[#allocation2 + $0x248] sm:$0xf0]  ;;  %v1505_v39 = vor.u32 %v1834_v28, %v1502_v29 }
  0x62   :  { %1039 = vmatpush.bf16.msra.mxu1 %v1193_v41  ;;  %v1858_v41 = vld [vmem:[#allocation2 + $0x344] sm:$0xf]  ;;  %v1438_v27 = vld [vmem:[#allocation2 + $0x208] sm:$0xf0] }
  0x63   :  { %1052 = vmatpush.bf16.msra.mxu2 %v1257_v42  ;;  %v1473_v42 = vor.u32 %v1826_v36, %v1470_v37  ;;  %v1566_v36 = vld [vmem:[#allocation2 + $0x308] sm:$0xf0]  ;;  %v1377_v37 = vor.u32 %v1802_v19, %v1374_v23 }
  0x64   :  { %1065 = vmatpush.bf16.msra.mxu3 %v1321_v49  ;;  %v1840_v49 = vld [vmem:[#allocation2 + $0x2b4] sm:$0xf] }
  0x65   :  { %1027 = vmatpush.bf16.msra.mxu0 %v1693_v57  ;;  %v1465_v57 = vor.u32 %v1824_v46, %v1462_v47  ;;  %v1876_v47 = vld [vmem:[#allocation2 + $0x3d4] sm:$0xf] }
  0x66   :  { %1040 = vmatpush.bf16.msra.mxu1 %v1185_v61  ;;  %v1822_v61 = vld [vmem:[#allocation2 + $0x224] sm:$0xf] }
  0x67   :  { %1053 = vmatpush.bf16.msra.mxu2 %v1249_v62  ;;  %v1454_v62 = vld [vmem:[#allocation2 + $0x228] sm:$0xf0] }
  0x68   :  { %1066 = vmatpush.bf16.msra.mxu3 %v1313_v5  ;;  %1028 = vmatmul.bf16.vlgmr.msra.gmra.mxu0 %v2006_v12  ;;  %v1457_v5 = vor.u32 %v1822_v61, %v1454_v62  ;;  %v1872_v61 = vld [vmem:[#allocation2 + $0x3b4] sm:$0xf] }
  0x69   :  { %1072 = vmatpush.bf16.msrb.mxu0 %v1433_v1  ;;  %1041 = vmatmul.bf16.vlgmr.msra.gmra.mxu1 %v1981_v21  ;;  %v1409_v21 = vor.u32 %v1810_v33, %v1406_v35  ;;  %v1518_v1 = vld [vmem:[#allocation2 + $0x2a8] sm:$0xf0]  ;;  %v1896_v33 = vld [vmem:[#allocation2 + $0x474] sm:$0xf]  ;;  %v1850_v35 = vld [vmem:[#allocation2 + $0x304] sm:$0xf] }
  0x6a   :  { %1085 = vmatpush.bf16.msrb.mxu1 %v1497_v2  ;;  %1054 = vmatmul.bf16.vlgmr.msra.gmra.mxu2 %v1986_v26  ;;  %v1598_v26 = vld [vmem:[#allocation2 + $0x348] sm:$0xf0]  ;;  %v1854_v2 = vld [vmem:[#allocation2 + $0x324] sm:$0xf]  ;;  %v1521_v7 = vor.u32 %v1838_v0, %v1518_v1  ;;  %v1888_v62 = vld [vmem:[#allocation2 + $0x434] sm:$0xf] }
  0x6b   :  { %1098 = vmatpush.bf16.msrb.mxu2 %v1561_v4  ;;  %1067 = vmatmul.bf16.vlgmr.msra.gmra.mxu3 %v1979_v20  ;;  %v1601_v48 = vor.u32 %v1858_v41, %v1598_v26  ;;  %v1526_v20 = vld [vmem:[#allocation2 + $0x2b8] sm:$0xf0]  ;;  %v1393_v4 = vor.u32 %v1806_v58, %v1390_v60  ;;  %v1585_v11 = vor.u32 %v1854_v2, %v1582_v3  ;;  %v1890_v58 = vld [vmem:[#allocation2 + $0x444] sm:$0xf]  ;;  %v1646_v1 = vld [vmem:[#allocation2 + $0x3a8] sm:$0xf0] }
  0x6c   :  { %1111 = vmatpush.bf16.msrb.mxu3 %v1625_v9  ;;  %v1529_v59 = vor.u32 %v1840_v49, %v1526_v20  ;;  %v1820_v9 = vld [vmem:[#allocation2 + $0x214] sm:$0xf]  ;;  %v1569_v26 = vor.u32 %v1850_v35, %v1566_v36  ;;  %v1734_v20 = vld [vmem:[#allocation2 + $0x458] sm:$0xf0]  ;;  %v1870_v0 = vld [vmem:[#allocation2 + $0x3a4] sm:$0xf] }
  0x6d   :  { %1073 = vmatpush.bf16.msrb.mxu0 %v1425_v15  ;;  %v1852_v15 = vld [vmem:[#allocation2 + $0x314] sm:$0xf]  ;;  %v1886_v2 = vld [vmem:[#allocation2 + $0x424] sm:$0xf]  ;;  %v1710_v3 = vld [vmem:[#allocation2 + $0x428] sm:$0xf0] }
  0x6e   :  { %1086 = vmatpush.bf16.msrb.mxu1 %v1489_v16  ;;  %v1574_v16 = vld [vmem:[#allocation2 + $0x318] sm:$0xf0]  ;;  %v1892_v49 = vld [vmem:[#allocation2 + $0x454] sm:$0xf] }
  0x6f   :  { %1099 = vmatpush.bf16.msrb.mxu2 %v1553_v18  ;;  %v1449_v18 = vor.u32 %v1820_v9, %v1446_v10  ;;  %v1577_v30 = vor.u32 %v1852_v15, %v1574_v16  ;;  %v1737_v54 = vor.u32 %v1892_v49, %v1734_v20  ;;  %v1702_v9 = vld [vmem:[#allocation2 + $0x418] sm:$0xf0]  ;;  %v1882_v15 = vld [vmem:[#allocation2 + $0x404] sm:$0xf]  ;;  %v1694_v16 = vld [vmem:[#allocation2 + $0x408] sm:$0xf0] }
  0x70   :  { %1112 = vmatpush.bf16.msrb.mxu3 %v1617_v25  ;;  %v1513_v25 = vor.u32 %v1836_v13, %v1510_v14  ;;  %v1866_v13 = vld [vmem:[#allocation2 + $0x384] sm:$0xf]  ;;  %v1630_v14 = vld [vmem:[#allocation2 + $0x388] sm:$0xf0] }
  0x71   :  { %1074 = vmatpush.bf16.msrb.mxu0 %v1417_v31  ;;  %v1880_v31 = vld [vmem:[#allocation2 + $0x3f4] sm:$0xf] }
  0x72   :  { %1087 = vmatpush.bf16.msrb.mxu1 %v1481_v32  ;;  %v1686_v32 = vld [vmem:[#allocation2 + $0x3f8] sm:$0xf0] }
  0x73   :  { %1100 = vmatpush.bf16.msrb.mxu2 %v1545_v34  ;;  %v1750_v34 = vld [vmem:[#allocation2 + $0x478] sm:$0xf0]  ;;  %v1689_v40 = vor.u32 %v1880_v31, %v1686_v32 }
  0x74   :  { %1113 = vmatpush.bf16.msrb.mxu3 %v1609_v38  ;;  %v1441_v38 = vor.u32 %v1818_v24, %v1438_v27  ;;  %v1753_v41 = vor.u32 %v1896_v33, %v1750_v34 }
  0x75   :  { %1075 = vmatpush.bf16.msrb.mxu0 %v1409_v21  ;;  %v1878_v21 = vld [vmem:[#allocation2 + $0x3e4] sm:$0xf] }
  0x76   :  { %1088 = vmatpush.bf16.msrb.mxu1 %v1473_v42  ;;  %v1678_v42 = vld [vmem:[#allocation2 + $0x3e8] sm:$0xf0] }
  0x77   :  { %1101 = vmatpush.bf16.msrb.mxu2 %v1537_v44  ;;  %v1742_v44 = vld [vmem:[#allocation2 + $0x468] sm:$0xf0]  ;;  %v1681_v45 = vor.u32 %v1878_v21, %v1678_v42 }
  0x78   :  { %1114 = vmatpush.bf16.msrb.mxu3 %v1601_v48  ;;  %v1745_v46 = vor.u32 %v1894_v43, %v1742_v44  ;;  %v1670_v48 = vld [vmem:[#allocation2 + $0x3d8] sm:$0xf0] }
  0x79   :  { %1076 = vmatpush.bf16.msrb.mxu0 %v1401_v56  ;;  %v1673_v52 = vor.u32 %v1876_v47, %v1670_v48  ;;  %v1874_v56 = vld [vmem:[#allocation2 + $0x3c4] sm:$0xf] }
  0x7a   :  { %1089 = vmatpush.bf16.msrb.mxu1 %v1465_v57  ;;  %v1662_v57 = vld [vmem:[#allocation2 + $0x3c8] sm:$0xf0] }
  0x7b   :  { %1102 = vmatpush.bf16.msrb.mxu2 %v1529_v59  ;;  %v1726_v59 = vld [vmem:[#allocation2 + $0x448] sm:$0xf0]  ;;  %v1665_v60 = vor.u32 %v1874_v56, %v1662_v57 }
  0x7c   :  { %1115 = vmatpush.bf16.msrb.mxu3 %v1593_v63  ;;  %v1718_v63 = vld [vmem:[#allocation2 + $0x438] sm:$0xf0] }
  0x7d   :  { %1077 = vmatpush.bf16.msrb.mxu0 %v1393_v4  ;;  %v1649_v4 = vor.u32 %v1870_v0, %v1646_v1 }
  0x7e   :  { %1090 = vmatpush.bf16.msrb.mxu1 %v1457_v5  ;;  %v1713_v5 = vor.u32 %v1886_v2, %v1710_v3  ;;  %v1156_v2 = vlaneseq }
  0x7f   :  { %1103 = vmatpush.bf16.msrb.mxu2 %v1521_v7  ;;  %v1638_v7 = vld [vmem:[#allocation2 + $0x398] sm:$0xf0] }
  0x80   :  { %1116 = vmatpush.bf16.msrb.mxu3 %v1585_v11  ;;  %v1641_v10 = vor.u32 %v1868_v6, %v1638_v7  ;;  %v1705_v11 = vor.u32 %v1884_v8, %v1702_v9  ;;  %vm1158_vm1 = vcmp.lt.s32.totalorder %v1156_v2, 256 }
  0x81   :  { %1078 = vmatpush.bf16.msrb.mxu0 %v1385_v17  ;;  %v1633_v17 = vor.u32 %v1866_v13, %v1630_v14 }
  0x82   :  { %1091 = vmatpush.bf16.msrb.mxu1 %v1449_v18  ;;  %v1697_v18 = vor.u32 %v1882_v15, %v1694_v16 }
  0x83   :  { %1104 = vmatpush.bf16.msrb.mxu2 %v1513_v25 }
  0x84   :  { %1117 = vmatpush.bf16.msrb.mxu3 %v1577_v30 }
  0x85   :  { %1079 = vmatpush.bf16.msrb.mxu0 %v1377_v37 }
  0x86   :  { %1092 = vmatpush.bf16.msrb.mxu1 %v1441_v38 }
  0x87   :  { %1105 = vmatpush.bf16.msrb.mxu2 %v1505_v39 }
  0x88   :  { %1118 = vmatpush.bf16.msrb.mxu3 %v1569_v26  ;;  %1080 = vmatmul.bf16.vlgmr.msrb.gmra.mxu0 %v1983_v22  ;;  %v1729_v22 = vor.u32 %v1890_v58, %v1726_v59 }
  0x89   :  { %1124 = vmatpush.bf16.msra.mxu0 %v1689_v40  ;;  %1093 = vmatmul.bf16.vlgmr.msrb.gmra.mxu1 %v1993_v51  ;;  %v1654_v51 = vld [vmem:[#allocation2 + $0x3b8] sm:$0xf0] }
  0x8a   :  { %1137 = vmatpush.bf16.msra.mxu1 %v1753_v41  ;;  %1106 = vmatmul.bf16.vlgmr.msrb.gmra.mxu2 %v2000_v55  ;;  %v1657_v55 = vor.u32 %v1872_v61, %v1654_v51 }
  0x8b   :  { %1119 = vmatmul.bf16.vlgmr.msrb.gmra.mxu3 %v1991_v50  ;;  %v1721_v50 = vor.u32 %v1888_v62, %v1718_v63 }
  0x8d   :  { %1125 = vmatpush.bf16.msra.mxu0 %v1681_v45 }
  0x8e   :  { %1138 = vmatpush.bf16.msra.mxu1 %v1745_v46 }
  0x91   :  { %1126 = vmatpush.bf16.msra.mxu0 %v1673_v52 }
  0x92   :  { %1139 = vmatpush.bf16.msra.mxu1 %v1737_v54 }
  0x95   :  { %1127 = vmatpush.bf16.msra.mxu0 %v1665_v60 }
  0x96   :  { %1140 = vmatpush.bf16.msra.mxu1 %v1729_v22 }
  0x99   :  { %1128 = vmatpush.bf16.msra.mxu0 %v1657_v55 }
  0x9a   :  { %1141 = vmatpush.bf16.msra.mxu1 %v1721_v50 }
  0x9d   :  { %1129 = vmatpush.bf16.msra.mxu0 %v1649_v4 }
  0x9e   :  { %1142 = vmatpush.bf16.msra.mxu1 %v1713_v5 }
  0xa1   :  { %1130 = vmatpush.bf16.msra.mxu0 %v1641_v10 }
  0xa2   :  { %1143 = vmatpush.bf16.msra.mxu1 %v1705_v11 }
  0xa5   :  { %1131 = vmatpush.bf16.msra.mxu0 %v1633_v17 }
  0xa6   :  { %1144 = vmatpush.bf16.msra.mxu1 %v1697_v18 }
  0xa8   :  { %1132 = vmatmul.bf16.vlgmr.msra.gmra.mxu0 %v1995_v53 }
  0xa9   :  { %1145 = vmatmul.bf16.vlgmr.msra.gmra.mxu1 %v2006_v12 }
  0xab   :  { %v925_v19 = vpop.f32.mrf.mxu0 }
  0xac   :  { %v938_v23 = vpop.f32.mrf.mxu1 }
  0xad   :  { %v939_v24 = vadd.f32 %v938_v23, %v925_v19 }
  0xaf   :  { %v951_v25 = vpop.f32.mrf.mxu2 }
  0xb0   :  { %v952_v27 = vadd.f32 %v951_v25, %v939_v24  ;;  %v964_v28 = vpop.f32.mrf.mxu3 }
  0xb2   :  { %v965_v29 = vadd.f32 %v964_v28, %v952_v27 }
  0xb3   :  { %v927_v30 = vpop.f32.mrf.mxu0 }
  0xb4   :  { %v940_v31 = vpop.f32.mrf.mxu1 }
  0xb7   :  { %v953_v32 = vpop.f32.mrf.mxu2 }
  0xb8   :  { %v966_v33 = vpop.f32.mrf.mxu3 }
  0xc5   :  { %v977_v34 = vpop.f32.mrf.mxu0 }
  0xc6   :  { %v978_v35 = vadd.f32 %v977_v34, %v965_v29  ;;  %v990_v36 = vpop.f32.mrf.mxu1 }
  0xc8   :  { %v991_v37 = vadd.f32 %v990_v36, %v978_v35 }
  0xcd   :  { %v1003_v38 = vpop.f32.mrf.mxu2  ;;  %v979_v53 = vpop.f32.mrf.mxu0 }
  0xce   :  { %v1004_v39 = vadd.f32 %v1003_v38, %v991_v37  ;;  %v1016_v40 = vpop.f32.mrf.mxu3  ;;  %v992_v12 = vpop.f32.mrf.mxu1 }
  0xd0   :  { %v1017_v41 = vadd.f32 %v1016_v40, %v1004_v39 }
  0xd5   :  { %v1005_v26 = vpop.f32.mrf.mxu2 }
  0xd6   :  { %v1018_v21 = vpop.f32.mrf.mxu3 }
  0xe5   :  { %v1029_v42 = vpop.f32.mrf.mxu0 }
  0xe6   :  { %v1042_v43 = vpop.f32.mrf.mxu1  ;;  %v1030_v4 = vadd.f32 %v1029_v42, %v1017_v41 }
  0xed   :  { %v1055_v44 = vpop.f32.mrf.mxu2  ;;  %v1031_v45 = vpop.f32.mrf.mxu0 }
  0xee   :  { %v1068_v46 = vpop.f32.mrf.mxu3  ;;  %v1044_v47 = vpop.f32.mrf.mxu1  ;;  %v1056_v56 = vadd.f32 %v1055_v44, %v1042_v43 }
  0xf0   :  { %v1069_v60 = vadd.f32 %v1068_v46, %v1056_v56 }
  0xf5   :  { %v1057_v48 = vpop.f32.mrf.mxu2 }
  0xf6   :  { %v1070_v49 = vpop.f32.mrf.mxu3 }
 0x105   :  { %v1081_v20 = vpop.f32.mrf.mxu0 }
 0x106   :  { %v1094_v52 = vpop.f32.mrf.mxu1  ;;  %v1082_v61 = vadd.f32 %v1081_v20, %v1069_v60 }
 0x108   :  { %v1095_v62 = vadd.f32 %v1094_v52, %v1082_v61 }
 0x10d   :  { %v1107_v54 = vpop.f32.mrf.mxu2  ;;  %v1083_v58 = vpop.f32.mrf.mxu0 }
 0x10e   :  { %v1120_v57 = vpop.f32.mrf.mxu3  ;;  %v1096_v59 = vpop.f32.mrf.mxu1  ;;  %v1108_v63 = vadd.f32 %v1107_v54, %v1095_v62 }
 0x110   :  { %v1121_v55 = vadd.f32 %v1120_v57, %v1108_v63 }
 0x115   :  { %v1109_v22 = vpop.f32.mrf.mxu2 }
 0x116   :  { %v1122_v51 = vpop.f32.mrf.mxu3 }
 0x125   :  { %v1133_v50 = vpop.f32.mrf.mxu0 }
 0x126   :  { %v1134_v0 = vadd.f32 %v1133_v50, %v1121_v55  ;;  %v1146_v1 = vpop.f32.mrf.mxu1 }
 0x128   :  { %v1147_v3 = vadd.f32 %v1146_v1, %v1134_v0 }
 0x12a   :  { %v1152_v5 = vrot.slane %v1147_v3, 7 }
 0x12c   :  { %v1154_v6 = vsel %vm1153_vm0, %v1030_v4, %v1152_v5 }
 0x12d   :  { %v1135_v7 = vpop.f32.mrf.mxu0  ;;  %1160 = vst.msk [vmem:[#allocation5] sm:$0x3] %vm1158_vm1, %v1154_v6 }
 0x12e   :  { %v1148_v8 = vpop.f32.mrf.mxu1  ;;  %1171 = dma.vmem_to_hbm [thread:$0]  %s1167_s19, 32, %s1169_s22, [#allocation4]  }
 0x12f   :  { %1952 = dma.done.wait [#allocation4], 32  }
 0x130   :  { %1953 = vsyncadd [#allocation4], 4294967264 }
 0x131   :  { %1176 = vsyncpa [#allocation3], 1 }
 0x132   :  { %1177 = vsyncpa [#allocation4], 1 }

</bundles_post_ra>
